<compile_context>
chip_gen: v7x
topology: tpu7x:2x2x1
jax: 0.10.0
libtpu: 0.0.40
codegen_flags: <defaults>
</compile_context>

<pallas_src>
import math

import jax
import jax.numpy as jnp
from jax.experimental import pallas as pl
from jax.experimental.pallas import tpu as pltpu


def _vid_regressor_kernel(x_ref, w1_ref, w2_ref, w3_ref, o_ref):
    """Fused conv1x1 -> ReLU -> conv1x1 -> ReLU -> conv1x1 on one (batch, spatial) tile.

    x_ref : [B_BLK, C_in,  TILE_S]   (channels on sublanes, spatial on lanes)
    w1_ref: [C_mid, C_in]            (PyTorch conv weight layout [out, in])
    w2_ref: [C_mid, C_mid]
    w3_ref: [C_tgt, C_mid]
    o_ref : [B_BLK, C_tgt, TILE_S]
    """
    w1 = w1_ref[...]
    w2 = w2_ref[...]
    w3 = w3_ref[...]
    b_blk = x_ref.shape[0]
    for bi in range(b_blk):  # static, unrolled over the (small) batch block
        # Promote inside the kernel (== PyTorch's x.float(); bf16->f32 is lossless),
        # so the HBM read stays in the input dtype.
        x = x_ref[bi].astype(jnp.float32)
        h1 = jnp.maximum(jnp.dot(w1, x, preferred_element_type=jnp.float32), 0.0)
        h2 = jnp.maximum(jnp.dot(w2, h1, preferred_element_type=jnp.float32), 0.0)
        out = jnp.dot(w3, h2, preferred_element_type=jnp.float32)
        o_ref[bi] = out.astype(o_ref.dtype)


def _vmem_capacity_bytes():
    # Generation-aware VMEM capacity; fall back to the smallest per-TC capacity
    # (v7x: 64 MiB) so the budget is always safe.
    try:
        return int(pltpu.get_tpu_info().vmem_capacity_bytes)
    except Exception:
        return 64 * 2**20


def _largest_divisor_leq(n, cap):
    cap = max(1, min(n, cap))
    for d in range(cap, 0, -1):
        if n % d == 0:
            return d
    return 1


def vid_regressor(x, w1, w2, w3, *, out_dtype=jnp.float32, max_tile=32768,
                  vmem_fraction=0.30):
    """x: [N, C_in, S] (any float dtype); weights in [out, in] layout (f32).

    Returns [N, C_tgt, S] in out_dtype (default float32, matching PyTorch).
    """
    n, c_in, spatial = x.shape
    c_mid = w1.shape[0]
    c_tgt = w3.shape[0]
    x_bytes = x.dtype.itemsize
    out_bytes = jnp.dtype(out_dtype).itemsize

    vmem_cap = _vmem_capacity_bytes()
    vmem_budget = int(vmem_fraction * vmem_cap)

    w_bytes = (c_mid * c_in + c_mid * c_mid + c_tgt * c_mid) * 4

    # Per-lane VMEM cost of one grid step (batch block of 1):
    # double-buffered input + output blocks plus f32 intermediates (x, h1, h2, out).
    per_col = (2 * c_in * x_bytes + 2 * c_tgt * out_bytes
               + (c_in + 2 * c_mid + c_tgt) * 4)
    cols_budget = max(128, (vmem_budget - 2 * w_bytes) // max(per_col, 1))

    # ---- choose the (batch block, spatial tile) shape ------------------------
    if spatial <= cols_budget:
        # The whole spatial extent fits one tile -> block over batch instead of
        # emitting many tiny grid steps (grid is a serial loop on a TC).
        tile_s = spatial                      # full-extent block is always legal
        num_s_tiles = 1
        b_blk = _largest_divisor_leq(n, max(1, cols_budget // max(spatial, 1)))
        if n >= 2:
            # Keep >= 2 grid steps so both v7x TensorCores get work.
            b_blk = _largest_divisor_leq(n, max(1, min(b_blk, n // 2)))
    else:
        b_blk = 1
        tile_s = max(128, min(max_tile, (cols_budget // 128) * 128))
        num_s_tiles = pl.cdiv(spatial, tile_s)   # partial edge tile handled by Pallas

    # v7x megacore: avoid a (1, 1) grid when the spatial axis can be split.
    if n == 1 and b_blk == 1 and num_s_tiles == 1 and spatial >= 256:
        tile_s = ((spatial + 255) // 256) * 128   # ~half, rounded up to 128 lanes
        num_s_tiles = pl.cdiv(spatial, tile_s)

    num_b_tiles = n // b_blk

    # ---- scoped-VMEM limit derived from the actual per-step footprint --------
    needed = (2 * w_bytes                                             # weights (worst case: double-buffered)
              + 2 * b_blk * tile_s * (c_in * x_bytes + c_tgt * out_bytes)  # in/out blocks, double-buffered
              + b_blk * tile_s * (c_in + 2 * c_mid + c_tgt) * 4)      # f32 intermediates
    vmem_limit = int(min(int(0.9 * vmem_cap),
                         max(int(1.25 * needed), 16 * 2**20)))

    # ---- advisory cost estimate (kernel is HBM-bandwidth bound) --------------
    flops = 2 * n * spatial * (c_in * c_mid + c_mid * c_mid + c_mid * c_tgt)
    bytes_accessed = (n * spatial * c_in * x_bytes       # activation read
                      + n * spatial * c_tgt * out_bytes  # output write
                      + w_bytes)                         # weights
    cost = pl.CostEstimate(flops=int(flops), transcendentals=0,
                           bytes_accessed=int(bytes_accessed))

    def _call(single_buffer_weights):
        if single_buffer_weights:
            # Weight block index never changes -> one buffer is enough; frees VMEM
            # for a larger spatial tile when channel counts are in the hundreds.
            w_kwargs = dict(pipeline_mode=pl.Buffered(1))
        else:
            w_kwargs = {}
        in_specs = [
            # batch blocked; channels full-extent; spatial tiled (lane-dense).
            pl.BlockSpec((b_blk, c_in, tile_s), lambda b, s: (b, 0, s)),
            pl.BlockSpec((c_mid, c_in), lambda b, s: (0, 0), **w_kwargs),
            pl.BlockSpec((c_mid, c_mid), lambda b, s: (0, 0), **w_kwargs),
            pl.BlockSpec((c_tgt, c_mid), lambda b, s: (0, 0), **w_kwargs),
        ]
        out_specs = pl.BlockSpec((b_blk, c_tgt, tile_s), lambda b, s: (b, 0, s))

        grid_spec = pltpu.PrefetchScalarGridSpec(
            num_scalar_prefetch=0,
            grid=(num_b_tiles, num_s_tiles),
            in_specs=in_specs,
            out_specs=out_specs,
        )
        return pl.pallas_call(
            _vid_regressor_kernel,
            out_shape=jax.ShapeDtypeStruct((n, c_tgt, spatial), out_dtype),
            grid_spec=grid_spec,
            compiler_params=pltpu.CompilerParams(
                dimension_semantics=("parallel", "parallel"),
                vmem_limit_bytes=vmem_limit,
            ),
            cost_estimate=cost,
        )(x, w1, w2, w3)

    try:
        return _call(True)
    except Exception:
        # Fallback if single-buffered pipeline mode is rejected by this JAX version.
        return _call(False)


class VIDLossPallas:
    """JAX/Pallas port of VIDLoss.forward (returns (pred_mean, log_scale))."""

    def __init__(self, num_input_channels, num_mid_channel, num_target_channels,
                 init_pred_var=5.0, eps=1e-5, key=None):
        if key is None:
            key = jax.random.PRNGKey(0)
        k1, k2, k3 = jax.random.split(key, 3)

        # Conv3d(ks=1, bias=False) weights have PyTorch shape [out, in, 1, 1, 1];
        # we keep them in the squeezed [out, in] layout (no transpose needed).
        def init_w(k, c_in, c_out):
            bound = 1.0 / math.sqrt(c_in)   # Kaiming-uniform-like (fan_in = c_in)
            return jax.random.uniform(
                k, (c_out, c_in), dtype=jnp.float32, minval=-bound, maxval=bound
            )

        self.w1 = init_w(k1, num_input_channels, num_mid_channel)
        self.w2 = init_w(k2, num_mid_channel, num_mid_channel)
        self.w3 = init_w(k3, num_mid_channel, num_target_channels)

        # log_scale = log(exp(init_pred_var - eps) - 1) * ones(num_target_channels)
        self.log_scale = jnp.full(
            (num_target_channels,),
            math.log(math.exp(init_pred_var - eps) - 1.0),
            dtype=jnp.float32,
        )
        self.eps = eps

    def __call__(self, x, out_dtype=jnp.float32):
        # x: [N, C_in, D, H, W]  (NCDHW, like PyTorch Conv3d input).
        n, c_in, d, h, w = x.shape
        spatial = d * h * w
        # Pure reshape, no transpose / data movement: channels stay on sublanes,
        # flattened spatial goes to lanes.
        x_flat = x.reshape(n, c_in, spatial)

        # TODO(synk): fusing the downstream VID Gaussian-NLL reduction would
        # eliminate the full [N, C_tgt, S] output stream, but forward() only
        # returns (pred_mean, log_scale), so we match that contract.
        y = vid_regressor(x_flat, self.w1, self.w2, self.w3, out_dtype=out_dtype)

        c_tgt = self.w3.shape[0]
        pred_mean = y.reshape(n, c_tgt, d, h, w)   # again a pure reshape
        return pred_mean, self.log_scale


if __name__ == "__main__":
    key = jax.random.PRNGKey(0)
    k_x, k_w = jax.random.split(key)

    # Small shapes: batch=2, in_ch=4, mid_ch=8, target_ch=4, D=4, H=8, W=8
    # -> spatial per batch = 256 lanes, grid = (2, 1).
    num_input_channels, num_mid_channel, num_target_channels = 4, 8, 4
    d, h, w = 4, 8, 8
    x = jax.random.normal(
        k_x, (2, num_input_channels, d, h, w), dtype=jnp.float32
    )

    model = VIDLossPallas(num_input_channels, num_mid_channel,
                          num_target_channels, key=k_w)

    pred_mean, log_scale = model(x)
    jax.block_until_ready(pred_mean)
    jax.block_until_ready(log_scale)

    # Reference check in plain JAX (same math, no Pallas).
    xr = x.astype(jnp.float32).reshape(2, num_input_channels, -1)
    h1 = jnp.maximum(jnp.einsum("oi,bis->bos", model.w1, xr), 0.0)
    h2 = jnp.maximum(jnp.einsum("oi,bis->bos", model.w2, h1), 0.0)
    ref = jnp.einsum("oi,bis->bos", model.w3, h2).reshape(
        2, num_target_channels, d, h, w
    )

    assert pred_mean.shape == (2, num_target_channels, d, h, w)
    assert log_scale.shape == (num_target_channels,)
    expected_log_scale = math.log(math.exp(5.0 - 1e-5) - 1.0)
    assert jnp.allclose(log_scale, expected_log_scale)
    err = float(jnp.max(jnp.abs(pred_mean - ref)))
    assert jnp.allclose(pred_mean, ref, atol=1e-4, rtol=1e-4), err

    print("KERNEL_OK")
</pallas_src>

<mosaic_0001>
module attributes {stable_mosaic.version = 11 : i64} {
  func.func @_vid_regressor_kernel(%arg0: i32, %arg1: i32, %arg2: memref<1x4x256xf32, #tpu.memory_space<vmem>>, %arg3: memref<8x4xf32, #tpu.memory_space<vmem>>, %arg4: memref<8x8xf32, #tpu.memory_space<vmem>>, %arg5: memref<4x8xf32, #tpu.memory_space<vmem>>, %arg6: memref<1x4x256xf32, #tpu.memory_space<vmem>>) attributes {dimension_semantics = [#tpu.dimension_semantics<parallel>, #tpu.dimension_semantics<parallel>], iteration_bounds = array<i64: 2, 1>, scalar_prefetch = 0 : i64, scratch_operands = 0 : i64, tpu.core_type = #tpu.core_type<tc>, window_params = [{transform_indices = @transform_0, window_bounds = array<i64: 1, 4, 256>}, {pipeline_mode = #tpu.pipeline_mode<synchronous>, transform_indices = @transform_1, window_bounds = array<i64: 8, 4>}, {pipeline_mode = #tpu.pipeline_mode<synchronous>, transform_indices = @transform_2, window_bounds = array<i64: 8, 8>}, {pipeline_mode = #tpu.pipeline_mode<synchronous>, transform_indices = @transform_3, window_bounds = array<i64: 4, 8>}, {transform_indices = @transform_4, window_bounds = array<i64: 1, 4, 256>}]} {
    %c0 = arith.constant 0 : index
    %c0_0 = arith.constant 0 : index
    %0 = vector.load %arg3[%c0, %c0_0] : memref<8x4xf32, #tpu.memory_space<vmem>>, vector<8x4xf32>
    %c0_1 = arith.constant 0 : index
    %c0_2 = arith.constant 0 : index
    %1 = vector.load %arg4[%c0_1, %c0_2] : memref<8x8xf32, #tpu.memory_space<vmem>>, vector<8x8xf32>
    %c0_3 = arith.constant 0 : index
    %c0_4 = arith.constant 0 : index
    %2 = vector.load %arg5[%c0_3, %c0_4] : memref<4x8xf32, #tpu.memory_space<vmem>>, vector<4x8xf32>
    %c0_5 = arith.constant 0 : index
    %c0_6 = arith.constant 0 : index
    %c0_7 = arith.constant 0 : index
    %3 = vector.load %arg2[%c0_5, %c0_6, %c0_7] : memref<1x4x256xf32, #tpu.memory_space<vmem>>, vector<1x4x256xf32>
    %4 = vector.shape_cast %3 : vector<1x4x256xf32> to vector<4x256xf32>
    %cst = arith.constant dense<0.000000e+00> : vector<8x256xf32>
    %5 = tpu.matmul %0, %4, %cst {dimension_numbers = #tpu.dot_dimension_numbers<[1], [0], [0], [1], [0, 0, 1, 1], [], []>} : vector<8x4xf32>, vector<4x256xf32>, vector<8x256xf32> -> vector<8x256xf32>
    %cst_8 = arith.constant 0.000000e+00 : f32
    %6 = vector.broadcast %cst_8 : f32 to vector<8x256xf32>
    %7 = arith.maximumf %5, %6 : vector<8x256xf32>
    %cst_9 = arith.constant dense<0.000000e+00> : vector<8x256xf32>
    %8 = tpu.matmul %1, %7, %cst_9 {dimension_numbers = #tpu.dot_dimension_numbers<[1], [0], [0], [1], [0, 0, 1, 1], [], []>} : vector<8x8xf32>, vector<8x256xf32>, vector<8x256xf32> -> vector<8x256xf32>
    %cst_10 = arith.constant 0.000000e+00 : f32
    %9 = vector.broadcast %cst_10 : f32 to vector<8x256xf32>
    %10 = arith.maximumf %8, %9 : vector<8x256xf32>
    %cst_11 = arith.constant dense<0.000000e+00> : vector<4x256xf32>
    %11 = tpu.matmul %2, %10, %cst_11 {dimension_numbers = #tpu.dot_dimension_numbers<[1], [0], [0], [1], [0, 0, 1, 1], [], []>} : vector<4x8xf32>, vector<8x256xf32>, vector<4x256xf32> -> vector<4x256xf32>
    %c0_12 = arith.constant 0 : index
    %c0_13 = arith.constant 0 : index
    %c0_14 = arith.constant 0 : index
    %12 = vector.load %arg6[%c0_12, %c0_13, %c0_14] : memref<1x4x256xf32, #tpu.memory_space<vmem>>, vector<1x4x256xf32>
    %13 = vector.shape_cast %12 : vector<1x4x256xf32> to vector<4x256xf32>
    %14 = vector.shape_cast %11 : vector<4x256xf32> to vector<1x4x256xf32>
    tpu.vector_store %arg6[%c0_12, %c0_13, %c0_14], %14 {strides = array<i32>} : memref<1x4x256xf32, #tpu.memory_space<vmem>>, vector<1x4x256xf32>,
    return
  }
  func.func @transform_0(%arg0: i32, %arg1: i32) -> (i32, i32, i32) {
    %c0_i32 = arith.constant 0 : i32
    %c0_i32_0 = arith.constant 0 : i32
    return %arg0, %c0_i32, %arg1 : i32, i32, i32
  }
  func.func @transform_1(%arg0: i32, %arg1: i32) -> (i32, i32) {
    %c0_i32 = arith.constant 0 : i32
    %c0_i32_0 = arith.constant 0 : i32
    %c0_i32_1 = arith.constant 0 : i32
    return %c0_i32, %c0_i32_0 : i32, i32
  }
  func.func @transform_2(%arg0: i32, %arg1: i32) -> (i32, i32) {
    %c0_i32 = arith.constant 0 : i32
    %c0_i32_0 = arith.constant 0 : i32
    %c0_i32_1 = arith.constant 0 : i32
    return %c0_i32, %c0_i32_0 : i32, i32
  }
  func.func @transform_3(%arg0: i32, %arg1: i32) -> (i32, i32) {
    %c0_i32 = arith.constant 0 : i32
    %c0_i32_0 = arith.constant 0 : i32
    %c0_i32_1 = arith.constant 0 : i32
    return %c0_i32, %c0_i32_0 : i32, i32
  }
  func.func @transform_4(%arg0: i32, %arg1: i32) -> (i32, i32, i32) {
    %c0_i32 = arith.constant 0 : i32
    %c0_i32_0 = arith.constant 0 : i32
    return %arg0, %c0_i32, %arg1 : i32, i32, i32
  }
}

module attributes {stable_mosaic.version = 11 : i64} {
  func.func @_vid_regressor_kernel(%arg0: i32, %arg1: i32, %arg2: memref<1x4x256xf32, #tpu.memory_space<vmem>>, %arg3: memref<8x4xf32, #tpu.memory_space<vmem>>, %arg4: memref<8x8xf32, #tpu.memory_space<vmem>>, %arg5: memref<4x8xf32, #tpu.memory_space<vmem>>, %arg6: memref<1x4x256xf32, #tpu.memory_space<vmem>>) attributes {dimension_semantics = [#tpu.dimension_semantics<parallel>, #tpu.dimension_semantics<parallel>], iteration_bounds = array<i64: 2, 1>, scalar_prefetch = 0 : i64, scratch_operands = 0 : i64, tpu.core_type = #tpu.core_type<tc>, window_params = [{transform_indices = @transform_0, window_bounds = array<i64: 1, 4, 256>}, {pipeline_mode = #tpu.pipeline_mode<synchronous>, transform_indices = @transform_1, window_bounds = array<i64: 8, 4>}, {pipeline_mode = #tpu.pipeline_mode<synchronous>, transform_indices = @transform_2, window_bounds = array<i64: 8, 8>}, {pipeline_mode = #tpu.pipeline_mode<synchronous>, transform_indices = @transform_3, window_bounds = array<i64: 4, 8>}, {transform_indices = @transform_4, window_bounds = array<i64: 1, 4, 256>}]} {
    %c0 = arith.constant 0 : index
    %c0_0 = arith.constant 0 : index
    %0 = vector.load %arg3[%c0, %c0_0] : memref<8x4xf32, #tpu.memory_space<vmem>>, vector<8x4xf32>
    %c0_1 = arith.constant 0 : index
    %c0_2 = arith.constant 0 : index
    %1 = vector.load %arg4[%c0_1, %c0_2] : memref<8x8xf32, #tpu.memory_space<vmem>>, vector<8x8xf32>
    %c0_3 = arith.constant 0 : index
    %c0_4 = arith.constant 0 : index
    %2 = vector.load %arg5[%c0_3, %c0_4] : memref<4x8xf32, #tpu.memory_space<vmem>>, vector<4x8xf32>
    %c0_5 = arith.constant 0 : index
    %c0_6 = arith.constant 0 : index
    %c0_7 = arith.constant 0 : index
    %3 = vector.load %arg2[%c0_5, %c0_6, %c0_7] : memref<1x4x256xf32, #tpu.memory_space<vmem>>, vector<1x4x256xf32>
    %4 = vector.shape_cast %3 : vector<1x4x256xf32> to vector<4x256xf32>
    %cst = arith.constant dense<0.000000e+00> : vector<8x256xf32>
    %5 = tpu.matmul %0, %4, %cst {dimension_numbers = #tpu.dot_dimension_numbers<[1], [0], [0], [1], [0, 0, 1, 1], [], []>} : vector<8x4xf32>, vector<4x256xf32>, vector<8x256xf32> -> vector<8x256xf32>
    %cst_8 = arith.constant 0.000000e+00 : f32
    %6 = vector.broadcast %cst_8 : f32 to vector<8x256xf32>
    %7 = arith.maximumf %5, %6 : vector<8x256xf32>
    %cst_9 = arith.constant dense<0.000000e+00> : vector<8x256xf32>
    %8 = tpu.matmul %1, %7, %cst_9 {dimension_numbers = #tpu.dot_dimension_numbers<[1], [0], [0], [1], [0, 0, 1, 1], [], []>} : vector<8x8xf32>, vector<8x256xf32>, vector<8x256xf32> -> vector<8x256xf32>
    %cst_10 = arith.constant 0.000000e+00 : f32
    %9 = vector.broadcast %cst_10 : f32 to vector<8x256xf32>
    %10 = arith.maximumf %8, %9 : vector<8x256xf32>
    %cst_11 = arith.constant dense<0.000000e+00> : vector<4x256xf32>
    %11 = tpu.matmul %2, %10, %cst_11 {dimension_numbers = #tpu.dot_dimension_numbers<[1], [0], [0], [1], [0, 0, 1, 1], [], []>} : vector<4x8xf32>, vector<8x256xf32>, vector<4x256xf32> -> vector<4x256xf32>
    %c0_12 = arith.constant 0 : index
    %c0_13 = arith.constant 0 : index
    %c0_14 = arith.constant 0 : index
    %12 = vector.load %arg6[%c0_12, %c0_13, %c0_14] : memref<1x4x256xf32, #tpu.memory_space<vmem>>, vector<1x4x256xf32>
    %13 = vector.shape_cast %12 : vector<1x4x256xf32> to vector<4x256xf32>
    %14 = vector.shape_cast %11 : vector<4x256xf32> to vector<1x4x256xf32>
    tpu.vector_store %arg6[%c0_12, %c0_13, %c0_14], %14 {strides = array<i32>} : memref<1x4x256xf32, #tpu.memory_space<vmem>>, vector<1x4x256xf32>,
    return
  }
  func.func @transform_0(%arg0: i32, %arg1: i32) -> (i32, i32, i32) {
    %c0_i32 = arith.constant 0 : i32
    %c0_i32_0 = arith.constant 0 : i32
    return %arg0, %c0_i32, %arg1 : i32, i32, i32
  }
  func.func @transform_1(%arg0: i32, %arg1: i32) -> (i32, i32) {
    %c0_i32 = arith.constant 0 : i32
    %c0_i32_0 = arith.constant 0 : i32
    %c0_i32_1 = arith.constant 0 : i32
    return %c0_i32, %c0_i32_0 : i32, i32
  }
  func.func @transform_2(%arg0: i32, %arg1: i32) -> (i32, i32) {
    %c0_i32 = arith.constant 0 : i32
    %c0_i32_0 = arith.constant 0 : i32
    %c0_i32_1 = arith.constant 0 : i32
    return %c0_i32, %c0_i32_0 : i32, i32
  }
  func.func @transform_3(%arg0: i32, %arg1: i32) -> (i32, i32) {
    %c0_i32 = arith.constant 0 : i32
    %c0_i32_0 = arith.constant 0 : i32
    %c0_i32_1 = arith.constant 0 : i32
    return %c0_i32, %c0_i32_0 : i32, i32
  }
  func.func @transform_4(%arg0: i32, %arg1: i32) -> (i32, i32, i32) {
    %c0_i32 = arith.constant 0 : i32
    %c0_i32_0 = arith.constant 0 : i32
    return %arg0, %c0_i32, %arg1 : i32, i32, i32
  }
}

</mosaic_0001>

<bundles_post_ra>
// kernel: tpu_custom_call.1
= control target key start
LH: loop header
LB: loop body
LE: loop exit
PB: predicated region body
PF: predicated region fallthrough
CT: control target
= control target key end

     0   :  { %9 = vsyncpa [#allocation3], 0  ;;  %s992_s0 = inlined_call_operand.hbm [shape: f32[2,4,256], index: 0, kind: input, shape index: {}]   ;;  %s993_s1 = inlined_call_operand.vmem [shape: f32[8,4], index: 1, kind: input, shape index: {}]   ;;  %s994_s2 = inlined_call_operand.vmem [shape: f32[8,8], index: 2, kind: input, shape index: {}]   ;;  %s995_s3 = inlined_call_operand.vmem [shape: f32[4,8], index: 3, kind: input, shape index: {}]   ;;  %s996_s4 = inlined_call_operand.hbm [shape: f32[2,4,256], index: 4, kind: output, shape index: {}]  }
   0x1   :  { %11 = vsyncpa [#allocation3 + $0x1], 0 }
   0x2   :  { %12 = vsyncpa [#allocation4], 0 }
   0x3   :  { %14 = vsyncpa [#allocation4 + $0x1], 0  ;;  %s807_s15 = smov 0   ;;  %s809_s16 = smov 0  }
   0x4   :  { %s811_s17 = smov 0   ;;  %s813_s18 = smov 0  }
   0x5   :  { %s815_s19 = smov 0   ;;  %s817_s20 = smov 0  }
   0x6 LB: > { %s579_s21 = sadd.s32 4294967295, %s777_s20   ;;  %s580_s22 = sadd.s32 4294967294, %s777_s20   ;;  %s777_s20 = sphi %s817_s20, %s20_s20   ;;  %s773_s19 = sphi %s815_s19, %s1012_s19   ;;  %s769_s18 = sphi %s813_s18, %s1011_s18   ;;  %s765_s17 = sphi %s811_s17, %s1010_s17   ;;  %s761_s16 = sphi %s809_s16, %s1009_s16   ;;  %s757_s15 = sphi %s807_s15, %s1008_s15  }
   0x7   : > { %s32_s23 = sadd.s32 1, %s773_s19  ;;  %s41_s24 = sadd.s32 1, %s765_s17 }
   0x8   : > { %p34_p0 = scmp.ge.s32.totalorder %s32_s23, 2  ;;  %p48_p1 = scmp.ne.s32.totalorder %s765_s17, %s761_s16 }
   0x9   : > { %p49_p2 = scmp.eq.s32.totalorder %s777_s20, 0  ;;  %p54_p3 = scmp.ne.s32.totalorder %s761_s16, %s757_s15 }
   0xa   : > { %s1014_s23 = smov (%p34_p0, %s32_s23), 0  ;;  %p55_p5 = scmp.eq.s32.totalorder %s579_s21, 0 }
   0xb   : > { %p848_p4 = por %p49_p2, %p48_p1  ;;  %s36_s26 = ssub.s32 %s773_s19, %s1014_s23 }
   0xc   : > { %p143_p6 = scmp.eq.s32.totalorder %s579_s21, 1  ;;  %p39_p7 = scmp.eq.s32.totalorder %s36_s26, 0 }
   0xd   : > { %p854_p8 = por %p55_p5, %p54_p3  ;;  %p149_p10 = scmp.eq.s32.totalorder %s580_s22, 1 }
   0xe   : > { %p858_p9 = por %p143_p6, %p48_p1  ;;  %p613_p13 = scmp.lt.s32.totalorder %s777_s20, 2 }
   0xf   : > { %s863_s29 = scalar_select %p39_p7, %s765_s17, %s41_s24  }
  0x10   : > { %s1000_s28 = scalar_select %p858_p9, 1, 0 }
  0x11   : > { %p865_p11 = por %p149_p10, %p54_p3  ;;  %s178_s5 = sand.u32 1, %s765_s17  }
  0x12   : > { %s583_s6 = sshll.u32 %s178_s5, 3  ;;  %s599_s7 = sshll.u32 %s773_s19, 7 }
  0x13   : > { %s1001_s30 = scalar_select %p865_p11, 1, 0 }
  0x14   : > { %s876_s10 = scalar_lea.hbm %s992_s0, %s599_s7  ;;  %s182_s11 = scalar_lea.vmem [#allocation2], %s583_s6 }
  0x15   : > { %s192_s12 = sshll.u32 %s182_s11, 4  ;;  %p882_p0 = pnand %p613_p13, %p848_p4  ;;  %s878_s12 = int_to_ptr.vmem [resolvable:$true] %s192_s12 }
  0x16   : > { %s179_s14 = scalar_lea.sflag [#allocation3], %s178_s5  ;;  %s665_s21 = scalar_lea.hbm %s876_s10, 128 }
  0x17   : > { %p666_p3 = scmp.ne.s32.totalorder %s876_s10, %s665_s21  ;;  %p667_p5 = pneg %p882_p0 }
  0x18   : > { %s670_s25 = scalar_lea.hbm %s992_s0, 256  ;;  %p671_p4 = scmp.lt.u32.totalorder %s876_s10, %s992_s0 }
  0x19   : > { %p668_p6 = pnand %p667_p5, %p666_p3  ;;  %p672_p10 = scmp.lt.u32.totalorder %s670_s25, %s665_s21 }
  0x1a   : > { %p674_p12 = scmp.lt.u32.totalorder %s665_s21, %s876_s10 }
  0x1b   : > { %p669_p7 = pneg %p668_p6  ;;  %p673_p13 = por %p672_p10, %p671_p4 }
  0x1d   : > { %p675_p1 = por %p674_p12, %p673_p13 }
  0x1f   : > { %p676_p2 = pnand %p675_p1, %p669_p7 }
  0x21   : > { %679 = shalt.err (!%p676_p2)
}
  0x22   : > { %s680_s5 = scalar_lea.vmem %s878_s12, 128  ;;  %s779_s7 = smov [#allocation2]  }
  0x23   : > { %p681_p3 = scmp.ne.s32.totalorder %s878_s12, %s680_s5  ;;  %s685_s8 = sshll.u32 %s779_s7, 4  ;;  %s686_s8 = int_to_ptr.vmem [resolvable:$false] %s685_s8 }
  0x24   : > { %s687_s9 = scalar_lea.vmem %s686_s8, 256  ;;  %p688_p9 = scmp.lt.s32.totalorder %s878_s12, %s686_s8 }
  0x25   : > { %p683_p6 = pnand %p681_p3, %p667_p5  ;;  %p689_p4 = scmp.lt.s32.totalorder %s687_s9, %s680_s5 }
  0x27   : > { %p684_p11 = pneg %p683_p6  ;;  %p690_p10 = por %p689_p4, %p688_p9 }
  0x29   : > { %p691_p12 = pnand %p690_p10, %p684_p11 }
  0x2b   : > { %694 = shalt.err (!%p691_p12)
}
  0x2c   : > { %608 = dma.hbm_to_vmem [thread:$0]  (!%p882_p0), %s876_s10, 128, %s878_s12, %s179_s14  }
  0x2d   : > { %p1003_p1 = scmp.lt.s32.totalorder %s777_s20, 3  ;;  %p1004_p2 = scmp.ge.s32.totalorder %s777_s20, 1 }
  0x2f   : > { %p198_p5 = pnand %p1004_p2, %p1003_p1 }
  0x30   : > { %s918_s11 = sand.u32 (!%p198_p5), 1, %s761_s16  }
  0x31   : > { %201 = sbr.rel (%p198_p5) target bundleno = 725 (0x2d5), region = 36  ;;  %s587_s21 = sshll.u32 (!%p198_p5), %s918_s11, 3 }
  0x32   : > { %s204_s22 = scalar_lea.sflag (!%p198_p5), [#allocation3], %s918_s11  ;;  %s207_s13 = scalar_lea.vmem (!%p198_p5), [#allocation2], %s587_s21 }
  0x38   : > { %748 = dma.done.wait (%p854_p8), %s204_s22, 128  }
  0x39   : > { %750 = vsyncadd (%p854_p8), %s204_s22, 4294967168  ;;  %v780_v0 = vmov 0.0   ;;  %v237_v1 = vld [vmem:[%s207_s13] sm:$0xff]  ;;  %vm244_vm0 = vcmask 1043456   ;;  %vm240_vm1 = vcmask 31744   ;;  %vm322_vm2 = vcmask 64512  }
  0x3a   : > { %313 = vmatprep.mubr.f32.mxu0 %v780_v0  ;;  %390 = vmatprep.mubr.f32.mxu1 %v780_v0  ;;  %v239_v2 = vcombine.high %v237_v1, %v237_v1  ;;  %v234_v3 = vld [vmem:[%s993_s1] sm:$0xff]  ;;  %s600_s26 = sshll.u32 %s769_s18, 7  ;;  %s231_s6 = scalar_lea.vmem [#allocation5], %s587_s21 }
  0x3b   : > { %v235_v8 = vld [vmem:[%s994_s2] sm:$0xff]  ;;  %s495_s5 = sshll.u32 %s231_s6, 4  ;;  %s943_s9 = scalar_lea.hbm %s996_s4, %s600_s26  ;;  %s945_s5 = int_to_ptr.vmem [resolvable:$true] %s495_s5 }
  0x3c   : > { %589 = vmatprep.subr.msk.mxu0 %vm244_vm0, %v239_v2  ;;  %v236_v13 = vld [vmem:[%s995_s3] sm:$0xf]  ;;  %s479_s22 = scalar_lea.sflag [#allocation4], %s918_s11  ;;  %s695_s13 = scalar_lea.vmem %s945_s5, 128 }
  0x3d   : > { %590 = vmatpush1.msk.msra.mxu0 %vm244_vm0, %v237_v1  ;;  %p696_p8 = scmp.ne.s32.totalorder %s945_s5, %s695_s13  ;;  %p1005_p9 = scmp.ne.s32.totalorder %s1000_s28, 0 }
  0x3e   : > { %591 = vmatmul.mubr.msk.f32.vlgmr.msra.gmra.mrb[0].mxu0 %vm240_vm1, %v234_v3  ;;  %s781_s18 = smov [#allocation5]  }
  0x3f   : > { %466 = vmatprep.mubr.f32.mxu0 %v780_v0  ;;  %p697_p11 = pnand %p696_p8, %p1005_p9  ;;  %s699_s21 = sshll.u32 %s781_s18, 4  ;;  %s700_s21 = int_to_ptr.vmem [resolvable:$false] %s699_s21 }
  0x40   : > { %s701_s10 = scalar_lea.vmem %s700_s21, 256  ;;  %p702_p7 = scmp.lt.s32.totalorder %s945_s5, %s700_s21 }
  0x41   : > { %p698_p0 = pneg %p697_p11  ;;  %p703_p13 = scmp.lt.s32.totalorder %s701_s10, %s695_s13 }
  0x43   : > { %p704_p3 = por %p703_p13, %p702_p7 }
  0x45   : > { %p705_p6 = pnand %p704_p3, %p698_p0 }
 0x111   : > { %v315_v4 = vpop.f32.mrb[0].mxu0 }
 0x112   : > { %v317_v5 = vpop.f32.mrb[1].mxu0  ;;  %v320_v7 = vmax.f32 %v315_v4, 0.0 }
 0x113   : > { %v321_v6 = vmax.f32 %v317_v5, 0.0 }
 0x115   : > { %326 = vmatprep.subr.mxu1 %v321_v6 }
 0x116   : > { %327 = vmatpush1.msra.mxu1 %v320_v7 }
 0x117   : > { %592 = vmatmul.mubr.msk.f32.vlgmr.msra.gmra.mrb[0].mxu1 %vm322_vm2, %v235_v8 }
 0x1ea   : > { %v392_v9 = vpop.f32.mrb[0].mxu1 }
 0x1eb   : > { %v394_v10 = vpop.f32.mrb[1].mxu1  ;;  %v397_v12 = vmax.f32 %v392_v9, 0.0 }
 0x1ec   : > { %v398_v11 = vmax.f32 %v394_v10, 0.0 }
 0x1ee   : > { %402 = vmatprep.subr.mxu0 %v398_v11 }
 0x1ef   : > { %403 = vmatpush1.msra.mxu0 %v397_v12 }
 0x1f0   : > { %593 = vmatmul.mubr.msk.f32.vlgmr.msra.gmra.mrb[2].mxu0 %vm322_vm2, %v236_v13 }
 0x2c3   : > { %v468_v14 = vpop.f32.mrb[2].mxu0 }
 0x2c4   : > { %v470_v15 = vpop.f32.mrb[3].mxu0 }
 0x2c5   : > { %v475_v16 = vcombine.low %v468_v14, %v470_v15 }
 0x2c7   : > { %477 = vst [vmem:[%s231_s6] sm:$0xff] %v475_v16 }
 0x2c8   : > { %708 = shalt.err (!%p705_p6)
}
 0x2c9   : > { %s709_s11 = scalar_lea.hbm %s943_s9, 128  ;;  %s713_s14 = scalar_lea.hbm %s996_s4, 256 }
 0x2ca   : > { %p710_p4 = scmp.ne.s32.totalorder %s943_s9, %s709_s11  ;;  %p714_p1 = scmp.lt.u32.totalorder %s943_s9, %s996_s4 }
 0x2cb   : > { %p715_p2 = scmp.lt.u32.totalorder %s713_s14, %s709_s11  ;;  %p717_p8 = scmp.lt.u32.totalorder %s709_s11, %s943_s9 }
 0x2cc   : > { %p711_p10 = pnand %p710_p4, %p1005_p9 }
 0x2cd   : > { %p716_p5 = por %p715_p2, %p714_p1 }
 0x2ce   : > { %p712_p12 = pneg %p711_p10 }
 0x2cf   : > { %p718_p11 = por %p717_p8, %p716_p5 }
 0x2d1   : > { %p719_p0 = pnand %p718_p11, %p712_p12 }
 0x2d3   : > { %722 = shalt.err (!%p719_p0)
}
 0x2d4   : > { %603 = dma.vmem_to_hbm [thread:$0]  (%p1005_p9), %s945_s5, 128, %s943_s9, %s479_s22  }
 0x2d5 PF: > { %s507_s26 = sand.u32 1, %s757_s15   ;;  %p1006_p7 = scmp.ne.s32.totalorder %s1001_s30, 0 }
 0x2d6   : > { %p1007_p13 = scmp.ge.s32.totalorder %s777_s20, 2  ;;  %s508_s6 = scalar_lea.sflag [#allocation4], %s507_s26 }
 0x2d8   : > { %p610_p3 = pnand %p1007_p13, %p1006_p7 }
 0x2da   : > { %752 = dma.done.wait (!%p610_p3), %s508_s6, 128  }
 0x2db   : > { %754 = vsyncadd (!%p610_p3), %s508_s6, 4294967168  ;;  %s20_s20 = sadd.s32 1, %s777_s20   ;;  %s1008_s15 = smov %s761_s16 }
 0x2dc   : > { %p17_p6 = scmp.ge.s32.totalorder %s20_s20, 4   ;;  %s1009_s16 = smov %s765_s17 }
 0x2dd   : > { %s1010_s17 = smov %s863_s29  ;;  %s1011_s18 = smov %s773_s19 }
 0x2de   : > { %s1012_s19 = smov %s1014_s23  ;;  %19 = sbr.rel (!%p17_p6) target bundleno = 6 (0x6), region = 81 }
 0x2e5   :  { %513 = vsyncpa [#allocation3], 1 }
 0x2e6   :  { %515 = vsyncpa [#allocation3 + $0x1], 1 }
 0x2e7   :  { %516 = vsyncpa [#allocation4], 1 }
 0x2e8   :  { %518 = vsyncpa [#allocation4 + $0x1], 1 }

// kernel: tpu_custom_call.1
= control target key start
LH: loop header
LB: loop body
LE: loop exit
PB: predicated region body
PF: predicated region fallthrough
CT: control target
= control target key end

     0   :  { %9 = vsyncpa [#allocation3], 0  ;;  %s992_s0 = inlined_call_operand.hbm [shape: f32[2,4,256], index: 0, kind: input, shape index: {}]   ;;  %s993_s1 = inlined_call_operand.vmem [shape: f32[8,4], index: 1, kind: input, shape index: {}]   ;;  %s994_s2 = inlined_call_operand.vmem [shape: f32[8,8], index: 2, kind: input, shape index: {}]   ;;  %s995_s3 = inlined_call_operand.vmem [shape: f32[4,8], index: 3, kind: input, shape index: {}]   ;;  %s996_s4 = inlined_call_operand.hbm [shape: f32[2,4,256], index: 4, kind: output, shape index: {}]  }
   0x1   :  { %11 = vsyncpa [#allocation3 + $0x1], 0 }
   0x2   :  { %12 = vsyncpa [#allocation4], 0 }
   0x3   :  { %14 = vsyncpa [#allocation4 + $0x1], 0  ;;  %s807_s15 = smov 0   ;;  %s809_s16 = smov 0  }
   0x4   :  { %s811_s17 = smov 0   ;;  %s813_s18 = smov 0  }
   0x5   :  { %s815_s19 = smov 0   ;;  %s817_s20 = smov 0  }
   0x6 LB: > { %s579_s21 = sadd.s32 4294967295, %s777_s20   ;;  %s580_s22 = sadd.s32 4294967294, %s777_s20   ;;  %s777_s20 = sphi %s817_s20, %s20_s20   ;;  %s773_s19 = sphi %s815_s19, %s1012_s19   ;;  %s769_s18 = sphi %s813_s18, %s1011_s18   ;;  %s765_s17 = sphi %s811_s17, %s1010_s17   ;;  %s761_s16 = sphi %s809_s16, %s1009_s16   ;;  %s757_s15 = sphi %s807_s15, %s1008_s15  }
   0x7   : > { %s32_s23 = sadd.s32 1, %s773_s19  ;;  %s41_s24 = sadd.s32 1, %s765_s17 }
   0x8   : > { %p34_p0 = scmp.ge.s32.totalorder %s32_s23, 2  ;;  %p48_p1 = scmp.ne.s32.totalorder %s765_s17, %s761_s16 }
   0x9   : > { %p49_p2 = scmp.eq.s32.totalorder %s777_s20, 0  ;;  %p54_p3 = scmp.ne.s32.totalorder %s761_s16, %s757_s15 }
   0xa   : > { %s1014_s23 = smov (%p34_p0, %s32_s23), 0  ;;  %p55_p5 = scmp.eq.s32.totalorder %s579_s21, 0 }
   0xb   : > { %p848_p4 = por %p49_p2, %p48_p1  ;;  %s36_s26 = ssub.s32 %s773_s19, %s1014_s23 }
   0xc   : > { %p143_p6 = scmp.eq.s32.totalorder %s579_s21, 1  ;;  %p39_p7 = scmp.eq.s32.totalorder %s36_s26, 0 }
   0xd   : > { %p854_p8 = por %p55_p5, %p54_p3  ;;  %p149_p10 = scmp.eq.s32.totalorder %s580_s22, 1 }
   0xe   : > { %p858_p9 = por %p143_p6, %p48_p1  ;;  %p613_p13 = scmp.lt.s32.totalorder %s777_s20, 2 }
   0xf   : > { %s863_s29 = scalar_select %p39_p7, %s765_s17, %s41_s24  }
  0x10   : > { %s1000_s28 = scalar_select %p858_p9, 1, 0 }
  0x11   : > { %p865_p11 = por %p149_p10, %p54_p3  ;;  %s178_s5 = sand.u32 1, %s765_s17  }
  0x12   : > { %s583_s6 = sshll.u32 %s178_s5, 3  ;;  %s599_s7 = sshll.u32 %s773_s19, 7 }
  0x13   : > { %s1001_s30 = scalar_select %p865_p11, 1, 0 }
  0x14   : > { %s876_s10 = scalar_lea.hbm %s992_s0, %s599_s7  ;;  %s182_s11 = scalar_lea.vmem [#allocation2], %s583_s6 }
  0x15   : > { %s192_s12 = sshll.u32 %s182_s11, 4  ;;  %p882_p0 = pnand %p613_p13, %p848_p4  ;;  %s878_s12 = int_to_ptr.vmem [resolvable:$true] %s192_s12 }
  0x16   : > { %s179_s14 = scalar_lea.sflag [#allocation3], %s178_s5  ;;  %s665_s21 = scalar_lea.hbm %s876_s10, 128 }
  0x17   : > { %p666_p3 = scmp.ne.s32.totalorder %s876_s10, %s665_s21  ;;  %p667_p5 = pneg %p882_p0 }
  0x18   : > { %s670_s25 = scalar_lea.hbm %s992_s0, 256  ;;  %p671_p4 = scmp.lt.u32.totalorder %s876_s10, %s992_s0 }
  0x19   : > { %p668_p6 = pnand %p667_p5, %p666_p3  ;;  %p672_p10 = scmp.lt.u32.totalorder %s670_s25, %s665_s21 }
  0x1a   : > { %p674_p12 = scmp.lt.u32.totalorder %s665_s21, %s876_s10 }
  0x1b   : > { %p669_p7 = pneg %p668_p6  ;;  %p673_p13 = por %p672_p10, %p671_p4 }
  0x1d   : > { %p675_p1 = por %p674_p12, %p673_p13 }
  0x1f   : > { %p676_p2 = pnand %p675_p1, %p669_p7 }
  0x21   : > { %679 = shalt.err (!%p676_p2)
}
  0x22   : > { %s680_s5 = scalar_lea.vmem %s878_s12, 128  ;;  %s779_s7 = smov [#allocation2]  }
  0x23   : > { %p681_p3 = scmp.ne.s32.totalorder %s878_s12, %s680_s5  ;;  %s685_s8 = sshll.u32 %s779_s7, 4  ;;  %s686_s8 = int_to_ptr.vmem [resolvable:$false] %s685_s8 }
  0x24   : > { %s687_s9 = scalar_lea.vmem %s686_s8, 256  ;;  %p688_p9 = scmp.lt.s32.totalorder %s878_s12, %s686_s8 }
  0x25   : > { %p683_p6 = pnand %p681_p3, %p667_p5  ;;  %p689_p4 = scmp.lt.s32.totalorder %s687_s9, %s680_s5 }
  0x27   : > { %p684_p11 = pneg %p683_p6  ;;  %p690_p10 = por %p689_p4, %p688_p9 }
  0x29   : > { %p691_p12 = pnand %p690_p10, %p684_p11 }
  0x2b   : > { %694 = shalt.err (!%p691_p12)
}
  0x2c   : > { %608 = dma.hbm_to_vmem [thread:$0]  (!%p882_p0), %s876_s10, 128, %s878_s12, %s179_s14  }
  0x2d   : > { %p1003_p1 = scmp.lt.s32.totalorder %s777_s20, 3  ;;  %p1004_p2 = scmp.ge.s32.totalorder %s777_s20, 1 }
  0x2f   : > { %p198_p5 = pnand %p1004_p2, %p1003_p1 }
  0x30   : > { %s918_s11 = sand.u32 (!%p198_p5), 1, %s761_s16  }
  0x31   : > { %201 = sbr.rel (%p198_p5) target bundleno = 725 (0x2d5), region = 36  ;;  %s587_s21 = sshll.u32 (!%p198_p5), %s918_s11, 3 }
  0x32   : > { %s204_s22 = scalar_lea.sflag (!%p198_p5), [#allocation3], %s918_s11  ;;  %s207_s13 = scalar_lea.vmem (!%p198_p5), [#allocation2], %s587_s21 }
  0x38   : > { %748 = dma.done.wait (%p854_p8), %s204_s22, 128  }
  0x39   : > { %750 = vsyncadd (%p854_p8), %s204_s22, 4294967168  ;;  %v780_v0 = vmov 0.0   ;;  %v237_v1 = vld [vmem:[%s207_s13] sm:$0xff]  ;;  %vm244_vm0 = vcmask 1043456   ;;  %vm240_vm1 = vcmask 31744   ;;  %vm322_vm2 = vcmask 64512  }
  0x3a   : > { %313 = vmatprep.mubr.f32.mxu0 %v780_v0  ;;  %390 = vmatprep.mubr.f32.mxu1 %v780_v0  ;;  %v239_v2 = vcombine.high %v237_v1, %v237_v1  ;;  %v234_v3 = vld [vmem:[%s993_s1] sm:$0xff]  ;;  %s600_s26 = sshll.u32 %s769_s18, 7  ;;  %s231_s6 = scalar_lea.vmem [#allocation5], %s587_s21 }
  0x3b   : > { %v235_v8 = vld [vmem:[%s994_s2] sm:$0xff]  ;;  %s495_s5 = sshll.u32 %s231_s6, 4  ;;  %s943_s9 = scalar_lea.hbm %s996_s4, %s600_s26  ;;  %s945_s5 = int_to_ptr.vmem [resolvable:$true] %s495_s5 }
  0x3c   : > { %589 = vmatprep.subr.msk.mxu0 %vm244_vm0, %v239_v2  ;;  %v236_v13 = vld [vmem:[%s995_s3] sm:$0xf]  ;;  %s479_s22 = scalar_lea.sflag [#allocation4], %s918_s11  ;;  %s695_s13 = scalar_lea.vmem %s945_s5, 128 }
  0x3d   : > { %590 = vmatpush1.msk.msra.mxu0 %vm244_vm0, %v237_v1  ;;  %p696_p8 = scmp.ne.s32.totalorder %s945_s5, %s695_s13  ;;  %p1005_p9 = scmp.ne.s32.totalorder %s1000_s28, 0 }
  0x3e   : > { %591 = vmatmul.mubr.msk.f32.vlgmr.msra.gmra.mrb[0].mxu0 %vm240_vm1, %v234_v3  ;;  %s781_s18 = smov [#allocation5]  }
  0x3f   : > { %466 = vmatprep.mubr.f32.mxu0 %v780_v0  ;;  %p697_p11 = pnand %p696_p8, %p1005_p9  ;;  %s699_s21 = sshll.u32 %s781_s18, 4  ;;  %s700_s21 = int_to_ptr.vmem [resolvable:$false] %s699_s21 }
  0x40   : > { %s701_s10 = scalar_lea.vmem %s700_s21, 256  ;;  %p702_p7 = scmp.lt.s32.totalorder %s945_s5, %s700_s21 }
  0x41   : > { %p698_p0 = pneg %p697_p11  ;;  %p703_p13 = scmp.lt.s32.totalorder %s701_s10, %s695_s13 }
  0x43   : > { %p704_p3 = por %p703_p13, %p702_p7 }
  0x45   : > { %p705_p6 = pnand %p704_p3, %p698_p0 }
 0x111   : > { %v315_v4 = vpop.f32.mrb[0].mxu0 }
 0x112   : > { %v317_v5 = vpop.f32.mrb[1].mxu0  ;;  %v320_v7 = vmax.f32 %v315_v4, 0.0 }
 0x113   : > { %v321_v6 = vmax.f32 %v317_v5, 0.0 }
 0x115   : > { %326 = vmatprep.subr.mxu1 %v321_v6 }
 0x116   : > { %327 = vmatpush1.msra.mxu1 %v320_v7 }
 0x117   : > { %592 = vmatmul.mubr.msk.f32.vlgmr.msra.gmra.mrb[0].mxu1 %vm322_vm2, %v235_v8 }
 0x1ea   : > { %v392_v9 = vpop.f32.mrb[0].mxu1 }
 0x1eb   : > { %v394_v10 = vpop.f32.mrb[1].mxu1  ;;  %v397_v12 = vmax.f32 %v392_v9, 0.0 }
 0x1ec   : > { %v398_v11 = vmax.f32 %v394_v10, 0.0 }
 0x1ee   : > { %402 = vmatprep.subr.mxu0 %v398_v11 }
 0x1ef   : > { %403 = vmatpush1.msra.mxu0 %v397_v12 }
 0x1f0   : > { %593 = vmatmul.mubr.msk.f32.vlgmr.msra.gmra.mrb[2].mxu0 %vm322_vm2, %v236_v13 }
 0x2c3   : > { %v468_v14 = vpop.f32.mrb[2].mxu0 }
 0x2c4   : > { %v470_v15 = vpop.f32.mrb[3].mxu0 }
 0x2c5   : > { %v475_v16 = vcombine.low %v468_v14, %v470_v15 }
 0x2c7   : > { %477 = vst [vmem:[%s231_s6] sm:$0xff] %v475_v16 }
 0x2c8   : > { %708 = shalt.err (!%p705_p6)
}
 0x2c9   : > { %s709_s11 = scalar_lea.hbm %s943_s9, 128  ;;  %s713_s14 = scalar_lea.hbm %s996_s4, 256 }
 0x2ca   : > { %p710_p4 = scmp.ne.s32.totalorder %s943_s9, %s709_s11  ;;  %p714_p1 = scmp.lt.u32.totalorder %s943_s9, %s996_s4 }
 0x2cb   : > { %p715_p2 = scmp.lt.u32.totalorder %s713_s14, %s709_s11  ;;  %p717_p8 = scmp.lt.u32.totalorder %s709_s11, %s943_s9 }
 0x2cc   : > { %p711_p10 = pnand %p710_p4, %p1005_p9 }
 0x2cd   : > { %p716_p5 = por %p715_p2, %p714_p1 }
 0x2ce   : > { %p712_p12 = pneg %p711_p10 }
 0x2cf   : > { %p718_p11 = por %p717_p8, %p716_p5 }
 0x2d1   : > { %p719_p0 = pnand %p718_p11, %p712_p12 }
 0x2d3   : > { %722 = shalt.err (!%p719_p0)
}
 0x2d4   : > { %603 = dma.vmem_to_hbm [thread:$0]  (%p1005_p9), %s945_s5, 128, %s943_s9, %s479_s22  }
 0x2d5 PF: > { %s507_s26 = sand.u32 1, %s757_s15   ;;  %p1006_p7 = scmp.ne.s32.totalorder %s1001_s30, 0 }
 0x2d6   : > { %p1007_p13 = scmp.ge.s32.totalorder %s777_s20, 2  ;;  %s508_s6 = scalar_lea.sflag [#allocation4], %s507_s26 }
 0x2d8   : > { %p610_p3 = pnand %p1007_p13, %p1006_p7 }
 0x2da   : > { %752 = dma.done.wait (!%p610_p3), %s508_s6, 128  }
 0x2db   : > { %754 = vsyncadd (!%p610_p3), %s508_s6, 4294967168  ;;  %s20_s20 = sadd.s32 1, %s777_s20   ;;  %s1008_s15 = smov %s761_s16 }
 0x2dc   : > { %p17_p6 = scmp.ge.s32.totalorder %s20_s20, 4   ;;  %s1009_s16 = smov %s765_s17 }
 0x2dd   : > { %s1010_s17 = smov %s863_s29  ;;  %s1011_s18 = smov %s773_s19 }
 0x2de   : > { %s1012_s19 = smov %s1014_s23  ;;  %19 = sbr.rel (!%p17_p6) target bundleno = 6 (0x6), region = 81 }
 0x2e5   :  { %513 = vsyncpa [#allocation3], 1 }
 0x2e6   :  { %515 = vsyncpa [#allocation3 + $0x1], 1 }
 0x2e7   :  { %516 = vsyncpa [#allocation4], 1 }
 0x2e8   :  { %518 = vsyncpa [#allocation4 + $0x1], 1 }

</bundles_post_ra>
